<compile_context>
chip_gen: v7x
topology: tpu7x:2x2x1
jax: 0.10.0
libtpu: 0.0.40
codegen_flags: <defaults>
</compile_context>

<pallas_src>
import functools

import jax
import jax.numpy as jnp
from jax.experimental import pallas as pl
from jax.experimental.pallas import tpu as pltpu

EPS = 1e-6  # TODO(synk): RMSNorm class not shown in source; standard eps assumed.
_HALO = 3   # 2 (conv1, k=5 pad=2) + 1 (conv2, k=3 pad=1)


def _round_up(n, m):
    return ((n + m - 1) // m) * m


def conv_block_kernel(xl_ref, x_ref, xr_ref, w1_ref, b1_ref, g1_ref, w2_ref,
                      g2_ref, o_ref, *, L, Lp, TL, p, seed, training,
                      mxu_dtype, eps):
    b = pl.program_id(0)
    j = pl.program_id(1)
    cout = o_ref.shape[-1]

    # ---- assemble halo'd input tile: global rows [j*TL - 3, j*TL + TL + 3) ----
    # Left/right refs are the 8-row x blocks adjacent to this tile (clamped at
    # the edges by the index_map); rows outside [0, Lp) are zeroed (= conv1 zero
    # pad; padded rows [L, Lp) are already zero in xp).  Built directly in the
    # MXU dtype so the im2col copies below move half the bytes.
    li = j * TL - _HALO + jax.lax.broadcasted_iota(jnp.int32, (_HALO, 1), 0)
    left = jnp.where(li >= 0, xl_ref[0, 8 - _HALO:8, :].astype(mxu_dtype), 0.0)
    ri = (j + 1) * TL + jax.lax.broadcasted_iota(jnp.int32, (_HALO, 1), 0)
    right = jnp.where(ri < Lp, xr_ref[0, 0:_HALO, :].astype(mxu_dtype), 0.0)
    xh = jnp.concatenate(
        [left, x_ref[0].astype(mxu_dtype), right], axis=0)      # (TL+6, Cin)

    # ---- conv1 (k=5, stride=1, pad=2, bias) as ONE im2col matmul ----
    # Compute TL+2 rows (global j*TL-1 .. j*TL+TL) so conv2 has its +-1 halo.
    Lh = TL + 2
    p1 = jnp.concatenate([xh[t:t + Lh, :] for t in range(5)], axis=-1)  # (TL+2, 5*Cin)
    h = jnp.dot(p1, w1_ref[...], preferred_element_type=jnp.float32)
    h = h + b1_ref[...].astype(jnp.float32)

    # ---- rms1 (over channels) + SiLU, f32, row-local ----
    h = h * jax.lax.rsqrt(jnp.mean(h * h, axis=-1, keepdims=True) + eps)
    h = h * g1_ref[...].astype(jnp.float32)
    h = h * jax.nn.sigmoid(h)

    # conv2's zero padding pads the *activation*, so zero any h row whose global
    # index lies outside the true sequence [0, L).
    g = j * TL - 1 + jax.lax.broadcasted_iota(jnp.int32, (Lh, 1), 0)
    h = jnp.where((g >= 0) & (g < L), h, 0.0)

    # ---- conv2 (k=3, stride=1, pad=1, no bias) as ONE im2col matmul ----
    hq = h.astype(mxu_dtype)
    p2 = jnp.concatenate([hq[t:t + TL, :] for t in range(3)], axis=-1)  # (TL, 3*Cout)
    h2 = jnp.dot(p2, w2_ref[...], preferred_element_type=jnp.float32)

    # ---- rms2 ----
    h2 = h2 * jax.lax.rsqrt(jnp.mean(h2 * h2, axis=-1, keepdims=True) + eps)
    h2 = h2 * g2_ref[...].astype(jnp.float32)

    # ---- dropout (inverted; F.dropout default training=True) ----
    if training and p > 0.0:
        rows = j * TL + jax.lax.broadcasted_iota(jnp.int32, (TL, cout), 0)
        cols = jax.lax.broadcasted_iota(jnp.int32, (TL, cout), 1)
        v = (jnp.int32(seed)
             + b * jnp.int32(1000003)
             + rows * jnp.int32(-1640531535)   # 2654435761 (Knuth) as int32
             + cols * jnp.int32(97))
        # murmur3-style integer finalizer (VPU int ops only; plenty for dropout)
        v = v ^ (v >> 16)
        v = v * jnp.int32(-2048144789)          # 0x85ebca6b
        v = v ^ (v >> 13)
        v = v * jnp.int32(-1028477387)          # 0xc2b2ae35
        v = v ^ (v >> 16)
        thresh = int(p * (1 << 23))             # integer compare, no itof/fmul
        keep = (v & jnp.int32((1 << 23) - 1)) >= thresh
        h2 = jnp.where(keep, h2 * (1.0 / (1.0 - p)), 0.0)

    o_ref[0] = h2.astype(o_ref.dtype)


def conv_block(x, w1, b1, g1, w2, g2, *, p=0.2, seed=0, training=True,
               tl=None, mxu_dtype=jnp.bfloat16, eps=EPS):
    """x: (B, L, C_in) channels-last.  Returns (B, L, C_out).

    w1: (C_out, C_in, 5) PyTorch conv1 weight, b1: (C_out,) conv1 bias,
    g1/g2: RMSNorm gains (C_out,), w2: (C_out, C_out, 3).
    """
    B, L, cin = x.shape
    cout = w1.shape[0]
    assert w1.shape == (cout, cin, 5) and w2.shape == (cout, cout, 3)

    # ---- choose L tile: multiple of 8, ~2 MiB of activations per tile ----
    if tl is None:
        bytes_per_row = (cin + cout) * 4
        tl = max(8, min(512, ((2 * 1024 * 1024) // bytes_per_row) // 8 * 8))
    tl = min(tl, _round_up(L, 8))
    assert tl % 8 == 0
    TL = tl
    Lp = _round_up(L, TL)
    nL = Lp // TL
    TLB = TL // 8          # tile size in 8-row blocks
    NB8 = Lp // 8          # number of 8-row blocks in (padded) x

    xp = x if Lp == L else jnp.pad(x, ((0, 0), (0, Lp - L), (0, 0)))

    # PyTorch conv weight (Cout, Cin, K) -> im2col (K*Cin, Cout), tap-major rows
    # matching the patch-concat order in the kernel.  Weights pre-cast to the MXU
    # dtype (halves their DMA); bias/gains stay f32.
    w1t = jnp.transpose(w1, (2, 1, 0)).reshape(5 * cin, cout).astype(mxu_dtype)
    w2t = jnp.transpose(w2, (2, 1, 0)).reshape(3 * cout, cout).astype(mxu_dtype)
    b1r = b1.reshape(1, cout).astype(jnp.float32)
    g1r = g1.reshape(1, cout).astype(jnp.float32)
    g2r = g2.reshape(1, cout).astype(jnp.float32)

    kernel = functools.partial(
        conv_block_kernel, L=L, Lp=Lp, TL=TL, p=float(p), seed=int(seed),
        training=bool(training), mxu_dtype=mxu_dtype, eps=float(eps))

    itemsize = x.dtype.itemsize
    cost = pl.CostEstimate(
        flops=2 * B * L * (5 * cin + 3 * cout) * cout,
        transcendentals=B * L * cout,
        bytes_accessed=B * Lp * (cin + cout) * itemsize
        + (w1t.size + w2t.size) * w1t.dtype.itemsize + 3 * cout * 4)

    out = pl.pallas_call(
        kernel,
        out_shape=jax.ShapeDtypeStruct((B, Lp, cout), x.dtype),
        grid_spec=pltpu.PrefetchScalarGridSpec(
            num_scalar_prefetch=0,
            grid=(B, nL),
            in_specs=[
                # 8-row block just left of the tile (clamped at the edge)
                pl.BlockSpec((1, 8, cin),
                             lambda b, j: (b, jnp.maximum(j * TLB - 1, 0), 0)),
                # the tile itself
                pl.BlockSpec((1, TL, cin), lambda b, j: (b, j, 0)),
                # 8-row block just right of the tile (clamped at the edge)
                pl.BlockSpec((1, 8, cin),
                             lambda b, j: (b, jnp.minimum((j + 1) * TLB, NB8 - 1), 0)),
                # weights / bias / gains: constant index_maps -> fetched once
                pl.BlockSpec((5 * cin, cout), lambda b, j: (0, 0)),
                pl.BlockSpec((1, cout), lambda b, j: (0, 0)),
                pl.BlockSpec((1, cout), lambda b, j: (0, 0)),
                pl.BlockSpec((3 * cout, cout), lambda b, j: (0, 0)),
                pl.BlockSpec((1, cout), lambda b, j: (0, 0)),
            ],
            out_specs=pl.BlockSpec((1, TL, cout), lambda b, j: (b, j, 0)),
        ),
        compiler_params=pltpu.CompilerParams(
            dimension_semantics=("parallel", "parallel"),
            vmem_limit_bytes=32 * 1024 * 1024,
        ),
        cost_estimate=cost,
    )(xp, xp, xp, w1t, b1r, g1r, w2t, g2r)

    return out if Lp == L else out[:, :L, :]


def _reference(x, w1, b1, g1, w2, g2, eps=EPS):
    """Pure-JAX (untiled, f32) reference of the ConvBlock forward, dropout off."""
    B, L, cin = x.shape
    cout = w1.shape[0]
    xpad = jnp.pad(x, ((0, 0), (2, 2), (0, 0)))
    h = jnp.stack([xpad[:, t:t + L, :] for t in range(5)], axis=2).reshape(B, L, 5 * cin)
    h = h @ jnp.transpose(w1, (2, 1, 0)).reshape(5 * cin, cout) + b1
    h = h * jax.lax.rsqrt(jnp.mean(h * h, -1, keepdims=True) + eps) * g1
    h = h * jax.nn.sigmoid(h)
    hpad = jnp.pad(h, ((0, 0), (1, 1), (0, 0)))
    h2 = jnp.stack([hpad[:, t:t + L, :] for t in range(3)], axis=2).reshape(B, L, 3 * cout)
    h2 = h2 @ jnp.transpose(w2, (2, 1, 0)).reshape(3 * cout, cout)
    h2 = h2 * jax.lax.rsqrt(jnp.mean(h2 * h2, -1, keepdims=True) + eps) * g2
    return h2


if __name__ == "__main__":
    B, L, C_IN, C_OUT = 2, 16, 4, 8
    key = jax.random.PRNGKey(0)
    kx, kw1, kb1, kw2, kx2 = jax.random.split(key, 5)

    x = jax.random.normal(kx, (B, L, C_IN), dtype=jnp.float32)
    w1 = jax.random.normal(kw1, (C_OUT, C_IN, 5), dtype=jnp.float32) * 0.1
    b1 = jax.random.normal(kb1, (C_OUT,), dtype=jnp.float32) * 0.1
    g1 = jnp.ones((C_OUT,), dtype=jnp.float32)
    w2 = jax.random.normal(kw2, (C_OUT, C_OUT, 3), dtype=jnp.float32) * 0.1
    g2 = jnp.ones((C_OUT,), dtype=jnp.float32)

    # 1) correctness check vs pure-JAX reference (dropout off, exact f32 matmuls)
    out_chk = conv_block(x, w1, b1, g1, w2, g2, p=0.0, training=False,
                         mxu_dtype=jnp.float32)
    ref = _reference(x, w1, b1, g1, w2, g2)
    assert jnp.allclose(out_chk, ref, atol=1e-4, rtol=1e-4), \
        float(jnp.max(jnp.abs(out_chk - ref)))

    # 2) exercise the L-tiling halo path (nL > 1) against the same reference
    x2 = jax.random.normal(kx2, (B, 32, C_IN), dtype=jnp.float32)
    out_tiled = conv_block(x2, w1, b1, g1, w2, g2, p=0.0, training=False,
                           tl=8, mxu_dtype=jnp.float32)
    ref2 = _reference(x2, w1, b1, g1, w2, g2)
    assert jnp.allclose(out_tiled, ref2, atol=1e-4, rtol=1e-4), \
        float(jnp.max(jnp.abs(out_tiled - ref2)))

    # 3) full forward as specified (training-mode dropout, bf16 MXU operands)
    out = conv_block(x, w1, b1, g1, w2, g2, p=0.2, seed=42)
    out = jax.block_until_ready(out)
    assert out.shape == (B, L, C_OUT), out.shape
    assert bool(jnp.all(jnp.isfinite(out)))
    print("KERNEL_OK")
</pallas_src>

<mosaic_0001>
module attributes {stable_mosaic.version = 11 : i64} {
  func.func @conv_block_kernel(%arg0: i32, %arg1: i32, %arg2: memref<1x8x4xf32, #tpu.memory_space<vmem>>, %arg3: memref<1x16x4xf32, #tpu.memory_space<vmem>>, %arg4: memref<1x8x4xf32, #tpu.memory_space<vmem>>, %arg5: memref<20x8xf32, #tpu.memory_space<vmem>>, %arg6: memref<1x8xf32, #tpu.memory_space<vmem>>, %arg7: memref<1x8xf32, #tpu.memory_space<vmem>>, %arg8: memref<24x8xf32, #tpu.memory_space<vmem>>, %arg9: memref<1x8xf32, #tpu.memory_space<vmem>>, %arg10: memref<1x16x8xf32, #tpu.memory_space<vmem>>) attributes {dimension_semantics = [#tpu.dimension_semantics<parallel>, #tpu.dimension_semantics<parallel>], iteration_bounds = array<i64: 2, 1>, scalar_prefetch = 0 : i64, scratch_operands = 0 : i64, tpu.core_type = #tpu.core_type<tc>, window_params = [{transform_indices = @transform_0, window_bounds = array<i64: 1, 8, 4>}, {transform_indices = @transform_1, window_bounds = array<i64: 1, 16, 4>}, {transform_indices = @transform_2, window_bounds = array<i64: 1, 8, 4>}, {pipeline_mode = #tpu.pipeline_mode<synchronous>, transform_indices = @transform_3, window_bounds = array<i64: 20, 8>}, {pipeline_mode = #tpu.pipeline_mode<synchronous>, transform_indices = @transform_4, window_bounds = array<i64: 1, 8>}, {pipeline_mode = #tpu.pipeline_mode<synchronous>, transform_indices = @transform_5, window_bounds = array<i64: 1, 8>}, {pipeline_mode = #tpu.pipeline_mode<synchronous>, transform_indices = @transform_6, window_bounds = array<i64: 24, 8>}, {pipeline_mode = #tpu.pipeline_mode<synchronous>, transform_indices = @transform_7, window_bounds = array<i64: 1, 8>}, {transform_indices = @transform_8, window_bounds = array<i64: 1, 16, 8>}]} {
    %c16_i32 = arith.constant 16 : i32
    %0 = arith.muli %arg1, %c16_i32 : i32
    %c3_i32 = arith.constant 3 : i32
    %1 = arith.subi %0, %c3_i32 : i32
    %2 = tpu.iota {dimensions = array<i32: 0>} : vector<3x1xi32>
    %3 = vector.broadcast %1 : i32 to vector<3x1xi32>
    %4 = arith.addi %3, %2 : vector<3x1xi32>
    %c0_i32 = arith.constant 0 : i32
    %5 = vector.broadcast %c0_i32 : i32 to vector<3x1xi32>
    %6 = arith.cmpi sge, %4, %5 : vector<3x1xi32>
    %c0 = arith.constant 0 : index
    %c5 = arith.constant 5 : index
    %c0_0 = arith.constant 0 : index
    %7 = vector.load %arg2[%c0, %c5, %c0_0] : memref<1x8x4xf32, #tpu.memory_space<vmem>>, vector<1x3x4xf32>
    %8 = vector.shape_cast %7 : vector<1x3x4xf32> to vector<3x4xf32>
    %cst = arith.constant 0.000000e+00 : f32
    %9 = vector.shape_cast %6 : vector<3x1xi1> to vector<3x1xi1>
    %10 = vector.broadcast %9 : vector<3x1xi1> to vector<3x4xi1>
    %11 = vector.broadcast %cst : f32 to vector<3x4xf32>
    %12 = arith.select %10, %8, %11 : vector<3x4xi1>, vector<3x4xf32>
    %c1_i32 = arith.constant 1 : i32
    %13 = arith.addi %arg1, %c1_i32 : i32
    %c16_i32_1 = arith.constant 16 : i32
    %14 = arith.muli %13, %c16_i32_1 : i32
    %15 = tpu.iota {dimensions = array<i32: 0>} : vector<3x1xi32>
    %16 = vector.broadcast %14 : i32 to vector<3x1xi32>
    %17 = arith.addi %16, %15 : vector<3x1xi32>
    %c16_i32_2 = arith.constant 16 : i32
    %18 = vector.broadcast %c16_i32_2 : i32 to vector<3x1xi32>
    %19 = arith.cmpi slt, %17, %18 : vector<3x1xi32>
    %c0_3 = arith.constant 0 : index
    %c0_4 = arith.constant 0 : index
    %c0_5 = arith.constant 0 : index
    %20 = vector.load %arg4[%c0_3, %c0_4, %c0_5] : memref<1x8x4xf32, #tpu.memory_space<vmem>>, vector<1x3x4xf32>
    %21 = vector.shape_cast %20 : vector<1x3x4xf32> to vector<3x4xf32>
    %cst_6 = arith.constant 0.000000e+00 : f32
    %22 = vector.shape_cast %19 : vector<3x1xi1> to vector<3x1xi1>
    %23 = vector.broadcast %22 : vector<3x1xi1> to vector<3x4xi1>
    %24 = vector.broadcast %cst_6 : f32 to vector<3x4xf32>
    %25 = arith.select %23, %21, %24 : vector<3x4xi1>, vector<3x4xf32>
    %c0_7 = arith.constant 0 : index
    %c0_8 = arith.constant 0 : index
    %c0_9 = arith.constant 0 : index
    %26 = vector.load %arg3[%c0_7, %c0_8, %c0_9] : memref<1x16x4xf32, #tpu.memory_space<vmem>>, vector<1x16x4xf32>
    %27 = vector.shape_cast %26 : vector<1x16x4xf32> to vector<16x4xf32>
    %28 = tpu.concatenate %12, %27, %25 in 0 : vector<3x4xf32>, vector<16x4xf32>, vector<3x4xf32> -> vector<22x4xf32>
    %29 = vector.extract_strided_slice %28 {offsets = [0, 0], sizes = [18, 4], strides = [1, 1]} : vector<22x4xf32> to vector<18x4xf32>
    %30 = vector.extract_strided_slice %28 {offsets = [1, 0], sizes = [18, 4], strides = [1, 1]} : vector<22x4xf32> to vector<18x4xf32>
    %31 = vector.extract_strided_slice %28 {offsets = [2, 0], sizes = [18, 4], strides = [1, 1]} : vector<22x4xf32> to vector<18x4xf32>
    %32 = vector.extract_strided_slice %28 {offsets = [3, 0], sizes = [18, 4], strides = [1, 1]} : vector<22x4xf32> to vector<18x4xf32>
    %33 = vector.extract_strided_slice %28 {offsets = [4, 0], sizes = [18, 4], strides = [1, 1]} : vector<22x4xf32> to vector<18x4xf32>
    %34 = tpu.concatenate %29, %30, %31, %32, %33 in 1 : vector<18x4xf32>, vector<18x4xf32>, vector<18x4xf32>, vector<18x4xf32>, vector<18x4xf32> -> vector<18x20xf32>
    %c0_10 = arith.constant 0 : index
    %c0_11 = arith.constant 0 : index
    %35 = vector.load %arg5[%c0_10, %c0_11] : memref<20x8xf32, #tpu.memory_space<vmem>>, vector<20x8xf32>
    %cst_12 = arith.constant dense<0.000000e+00> : vector<18x8xf32>
    %36 = tpu.matmul %34, %35, %cst_12 {dimension_numbers = #tpu.dot_dimension_numbers<[1], [0], [0], [1], [0, 0, 1, 1], [], []>} : vector<18x20xf32>, vector<20x8xf32>, vector<18x8xf32> -> vector<18x8xf32>
    %c0_13 = arith.constant 0 : index
    %c0_14 = arith.constant 0 : index
    %37 = vector.load %arg6[%c0_13, %c0_14] : memref<1x8xf32, #tpu.memory_space<vmem>>, vector<1x8xf32>
    %38 = vector.broadcast %37 : vector<1x8xf32> to vector<18x8xf32>
    %39 = arith.addf %36, %38 : vector<18x8xf32>
    %40 = arith.mulf %39, %39 : vector<18x8xf32>
    %cst_15 = arith.constant dense<0.000000e+00> : vector<18xf32>
    %41 = vector.multi_reduction <add>, %40, %cst_15 [1] : vector<18x8xf32> to vector<18xf32>
    %42 = vector.shape_cast %41 : vector<18xf32> to vector<18x1xf32>
    %cst_16 = arith.constant 8.000000e+00 : f32
    %43 = vector.broadcast %cst_16 : f32 to vector<18x1xf32>
    %44 = arith.divf %42, %43 : vector<18x1xf32>
    %cst_17 = arith.constant 9.99999997E-7 : f32
    %45 = vector.broadcast %cst_17 : f32 to vector<18x1xf32>
    %46 = arith.addf %44, %45 : vector<18x1xf32>
    %47 = math.rsqrt %46 : vector<18x1xf32>
    %48 = vector.broadcast %47 : vector<18x1xf32> to vector<18x8xf32>
    %49 = arith.mulf %39, %48 : vector<18x8xf32>
    %c0_18 = arith.constant 0 : index
    %c0_19 = arith.constant 0 : index
    %50 = vector.load %arg7[%c0_18, %c0_19] : memref<1x8xf32, #tpu.memory_space<vmem>>, vector<1x8xf32>
    %51 = vector.broadcast %50 : vector<1x8xf32> to vector<18x8xf32>
    %52 = arith.mulf %49, %51 : vector<18x8xf32>
    %53 = arith.negf %52 : vector<18x8xf32>
    %54 = math.exp %53 : vector<18x8xf32>
    %cst_20 = arith.constant 1.000000e+00 : f32
    %55 = vector.broadcast %cst_20 : f32 to vector<18x8xf32>
    %56 = arith.addf %55, %54 : vector<18x8xf32>
    %57 = arith.divf %55, %56 : vector<18x8xf32>
    %58 = arith.mulf %52, %57 : vector<18x8xf32>
    %c16_i32_21 = arith.constant 16 : i32
    %59 = arith.muli %arg1, %c16_i32_21 : i32
    %c1_i32_22 = arith.constant 1 : i32
    %60 = arith.subi %59, %c1_i32_22 : i32
    %61 = tpu.iota {dimensions = array<i32: 0>} : vector<18x1xi32>
    %62 = vector.broadcast %60 : i32 to vector<18x1xi32>
    %63 = arith.addi %62, %61 : vector<18x1xi32>
    %c0_i32_23 = arith.constant 0 : i32
    %64 = vector.broadcast %c0_i32_23 : i32 to vector<18x1xi32>
    %65 = arith.cmpi sge, %63, %64 : vector<18x1xi32>
    %c16_i32_24 = arith.constant 16 : i32
    %66 = vector.broadcast %c16_i32_24 : i32 to vector<18x1xi32>
    %67 = arith.cmpi slt, %63, %66 : vector<18x1xi32>
    %68 = arith.andi %65, %67 : vector<18x1xi1>
    %cst_25 = arith.constant 0.000000e+00 : f32
    %69 = vector.shape_cast %68 : vector<18x1xi1> to vector<18x1xi1>
    %70 = vector.broadcast %69 : vector<18x1xi1> to vector<18x8xi1>
    %71 = vector.broadcast %cst_25 : f32 to vector<18x8xf32>
    %72 = arith.select %70, %58, %71 : vector<18x8xi1>, vector<18x8xf32>
    %73 = vector.extract_strided_slice %72 {offsets = [0, 0], sizes = [16, 8], strides = [1, 1]} : vector<18x8xf32> to vector<16x8xf32>
    %74 = vector.extract_strided_slice %72 {offsets = [1, 0], sizes = [16, 8], strides = [1, 1]} : vector<18x8xf32> to vector<16x8xf32>
    %75 = vector.extract_strided_slice %72 {offsets = [2, 0], sizes = [16, 8], strides = [1, 1]} : vector<18x8xf32> to vector<16x8xf32>
    %76 = tpu.concatenate %73, %74, %75 in 1 : vector<16x8xf32>, vector<16x8xf32>, vector<16x8xf32> -> vector<16x24xf32>
    %c0_26 = arith.constant 0 : index
    %c0_27 = arith.constant 0 : index
    %77 = vector.load %arg8[%c0_26, %c0_27] : memref<24x8xf32, #tpu.memory_space<vmem>>, vector<24x8xf32>
    %cst_28 = arith.constant dense<0.000000e+00> : vector<16x8xf32>
    %78 = tpu.matmul %76, %77, %cst_28 {dimension_numbers = #tpu.dot_dimension_numbers<[1], [0], [0], [1], [0, 0, 1, 1], [], []>} : vector<16x24xf32>, vector<24x8xf32>, vector<16x8xf32> -> vector<16x8xf32>
    %79 = arith.mulf %78, %78 : vector<16x8xf32>
    %cst_29 = arith.constant dense<0.000000e+00> : vector<16xf32>
    %80 = vector.multi_reduction <add>, %79, %cst_29 [1] : vector<16x8xf32> to vector<16xf32>
    %81 = vector.shape_cast %80 : vector<16xf32> to vector<16x1xf32>
    %cst_30 = arith.constant 8.000000e+00 : f32
    %82 = vector.broadcast %cst_30 : f32 to vector<16x1xf32>
    %83 = arith.divf %81, %82 : vector<16x1xf32>
    %cst_31 = arith.constant 9.99999997E-7 : f32
    %84 = vector.broadcast %cst_31 : f32 to vector<16x1xf32>
    %85 = arith.addf %83, %84 : vector<16x1xf32>
    %86 = math.rsqrt %85 : vector<16x1xf32>
    %87 = vector.broadcast %86 : vector<16x1xf32> to vector<16x8xf32>
    %88 = arith.mulf %78, %87 : vector<16x8xf32>
    %c0_32 = arith.constant 0 : index
    %c0_33 = arith.constant 0 : index
    %89 = vector.load %arg9[%c0_32, %c0_33] : memref<1x8xf32, #tpu.memory_space<vmem>>, vector<1x8xf32>
    %90 = vector.broadcast %89 : vector<1x8xf32> to vector<16x8xf32>
    %91 = arith.mulf %88, %90 : vector<16x8xf32>
    %c0_34 = arith.constant 0 : index
    %c0_35 = arith.constant 0 : index
    %c0_36 = arith.constant 0 : index
    %92 = vector.load %arg10[%c0_34, %c0_35, %c0_36] : memref<1x16x8xf32, #tpu.memory_space<vmem>>, vector<1x16x8xf32>
    %93 = vector.shape_cast %92 : vector<1x16x8xf32> to vector<16x8xf32>
    %94 = vector.shape_cast %91 : vector<16x8xf32> to vector<1x16x8xf32>
    tpu.vector_store %arg10[%c0_34, %c0_35, %c0_36], %94 {strides = array<i32>} : memref<1x16x8xf32, #tpu.memory_space<vmem>>, vector<1x16x8xf32>,
    return
  }
  func.func @transform_0(%arg0: i32, %arg1: i32) -> (i32, i32, i32) {
    %c2_i32 = arith.constant 2 : i32
    %0 = arith.muli %arg1, %c2_i32 : i32
    %c1_i32 = arith.constant 1 : i32
    %1 = arith.subi %0, %c1_i32 : i32
    %c0_i32 = arith.constant 0 : i32
    %2 = arith.maxsi %1, %c0_i32 : i32
    %c0_i32_0 = arith.constant 0 : i32
    %c0_i32_1 = arith.constant 0 : i32
    return %arg0, %2, %c0_i32_0 : i32, i32, i32
  }
  func.func @transform_1(%arg0: i32, %arg1: i32) -> (i32, i32, i32) {
    %c0_i32 = arith.constant 0 : i32
    %c0_i32_0 = arith.constant 0 : i32
    return %arg0, %arg1, %c0_i32 : i32, i32, i32
  }
  func.func @transform_2(%arg0: i32, %arg1: i32) -> (i32, i32, i32) {
    %c1_i32 = arith.constant 1 : i32
    %0 = arith.addi %arg1, %c1_i32 : i32
    %c2_i32 = arith.constant 2 : i32
    %1 = arith.muli %0, %c2_i32 : i32
    %c1_i32_0 = arith.constant 1 : i32
    %2 = arith.minsi %1, %c1_i32_0 : i32
    %c0_i32 = arith.constant 0 : i32
    %c0_i32_1 = arith.constant 0 : i32
    return %arg0, %2, %c0_i32 : i32, i32, i32
  }
  func.func @transform_3(%arg0: i32, %arg1: i32) -> (i32, i32) {
    %c0_i32 = arith.constant 0 : i32
    %c0_i32_0 = arith.constant 0 : i32
    %c0_i32_1 = arith.constant 0 : i32
    return %c0_i32, %c0_i32_0 : i32, i32
  }
  func.func @transform_4(%arg0: i32, %arg1: i32) -> (i32, i32) {
    %c0_i32 = arith.constant 0 : i32
    %c0_i32_0 = arith.constant 0 : i32
    %c0_i32_1 = arith.constant 0 : i32
    return %c0_i32, %c0_i32_0 : i32, i32
  }
  func.func @transform_5(%arg0: i32, %arg1: i32) -> (i32, i32) {
    %c0_i32 = arith.constant 0 : i32
    %c0_i32_0 = arith.constant 0 : i32
    %c0_i32_1 = arith.constant 0 : i32
    return %c0_i32, %c0_i32_0 : i32, i32
  }
  func.func @transform_6(%arg0: i32, %arg1: i32) -> (i32, i32) {
    %c0_i32 = arith.constant 0 : i32
    %c0_i32_0 = arith.constant 0 : i32
    %c0_i32_1 = arith.constant 0 : i32
    return %c0_i32, %c0_i32_0 : i32, i32
  }
  func.func @transform_7(%arg0: i32, %arg1: i32) -> (i32, i32) {
    %c0_i32 = arith.constant 0 : i32
    %c0_i32_0 = arith.constant 0 : i32
    %c0_i32_1 = arith.constant 0 : i32
    return %c0_i32, %c0_i32_0 : i32, i32
  }
  func.func @transform_8(%arg0: i32, %arg1: i32) -> (i32, i32, i32) {
    %c0_i32 = arith.constant 0 : i32
    %c0_i32_0 = arith.constant 0 : i32
    return %arg0, %arg1, %c0_i32 : i32, i32, i32
  }
}

</mosaic_0001>

<bundles_post_ra>
// kernel: tpu_custom_call.1
= control target key start
LH: loop header
LB: loop body
LE: loop exit
PB: predicated region body
PF: predicated region fallthrough
CT: control target
= control target key end

     0   :  { %s1229_s27 = smov 0   ;;  %s1231_s2 = smov 0   ;;  %s1365_s0 = inlined_call_operand.vmem [shape: f32[2,16,4], index: 0, kind: input, shape index: {}]   ;;  %s1366_s1 = inlined_call_operand.vmem [shape: f32[2,16,4], index: 1, kind: input, shape index: {}]   ;;  %s1367_s2 = inlined_call_operand.vmem [shape: f32[2,16,4], index: 2, kind: input, shape index: {}]   ;;  %s1368_s3 = inlined_call_operand.vmem [shape: f32[20,8], index: 3, kind: input, shape index: {}]   ;;  %s1369_s4 = inlined_call_operand.vmem [shape: f32[1,8], index: 4, kind: input, shape index: {}]   ;;  %s1370_s5 = inlined_call_operand.vmem [shape: f32[1,8], index: 5, kind: input, shape index: {}]   ;;  %s1371_s6 = inlined_call_operand.vmem [shape: f32[24,8], index: 6, kind: input, shape index: {}]   ;;  %s1372_s7 = inlined_call_operand.vmem [shape: f32[1,8], index: 7, kind: input, shape index: {}]   ;;  %s1373_s8 = inlined_call_operand.vmem [shape: f32[2,16,8], index: 8, kind: output, shape index: {}]  }
   0x1   :  { %s1233_s28 = smov 0  }
   0x2 LB: > { %s30_s29 = sadd.s32 1, %s1171_s2  ;;  %p1030_p0 = scmp.ge.s32.totalorder %s1175_s28, 1  ;;  %s1175_s28 = sphi %s1233_s28, %s18_s28   ;;  %s1171_s2 = sphi %s1231_s2, %s1375_s2   ;;  %s1167_s27 = sphi %s1229_s27, %s1374_s27  }
   0x3   : > { %p32_p1 = scmp.ge.s32.totalorder %s30_s29, 2  ;;  %p345_p2 = scmp.lt.s32.totalorder %s1175_s28, 3 }
   0x5   : > { %s1377_s29 = smov (%p32_p1, %s30_s29), 0  ;;  %p346_p3 = pnand %p1030_p0, %p345_p2 }
   0x6   : > { %p415_p4 = scmp.lt.s32.totalorder (!%p346_p3), %s1167_s27, 1  ;;  %v465_v0 = vlaneseq (!%p346_p3)  ;;  %v577_v1 = vld [vmem:[%s1368_s3] sm:$0xff] (!%p346_p3)  ;;  %v578_v3 = vld [vmem:[%s1368_s3 + $0x8] sm:$0xff] (!%p346_p3)  ;;  %v1177_v4 = vmov (!%p346_p3), 0.0|0.0   ;;  %v1178_v7 = vmov (!%p346_p3), 0.0   ;;  %vm487_vm1 = vcmask (!%p346_p3), 1042432  }
   0x7   : > { %349 = sbr.rel (%p346_p3) target bundleno = 1071 (0x42f), region = 52  ;;  %1093 = vmatprep.subr.bf16.mxu0 (!%p346_p3), %v1177_v4  ;;  %v1094_v5 = vpack.c.bf16 (!%p346_p3), %v578_v3, %v577_v1  ;;  %v495_v8 = vrot.slane (!%p346_p3), %v1178_v7, 5  ;;  %v579_v9 = vld [vmem:[%s1368_s3 + $0x10] sm:$0xf] (!%p346_p3)  ;;  %vm1179_vm2 = vmmov (!%p346_p3), 0   ;;  %vm501_vm3 = vcmask (!%p346_p3), 1046528  }
   0x8   : > { %v1250_v2 = vshrl.u32 (!%p346_p3), %v465_v0, 7  ;;  %1075 = vmatprep.mubr.msk.f32.mxu0 (!%p346_p3), %vm1179_vm2, %v1178_v7  ;;  %vm531_vm4 = vcmask (!%p346_p3), 1044480   ;;  %vm546_vm5 = vcmask (!%p346_p3), 1043456   ;;  %vm516_vm6 = vcmask (!%p346_p3), 1045504   ;;  %s1180_s21 = smov (!%p346_p3), 4   ;;  %s1181_s22 = smov (!%p346_p3), 12  }
   0x9   : > { %1095 = vmatpush3.bf16.msra.mxu0 (!%p346_p3), %v1094_v5  ;;  %s1182_s23 = smov (!%p346_p3), 8   ;;  %s1183_s24 = smov (!%p346_p3), 16   ;;  %vm561_vm7 = vcmask (!%p346_p3), 31744   ;;  %vm565_vm8 = vcmask (!%p346_p3), 64512   ;;  %vm569_vm9 = vcmask (!%p346_p3), 97280   ;;  %vm573_vm10 = vcmask (!%p346_p3), 130048  }
   0xa   : > { %v468_v6 = vadd.s32 (!%p346_p3), 4294967293, %v1250_v2  ;;  %1073 = vmatprep.subr.mxu0 (!%p346_p3), %v1178_v7  ;;  %vm587_vm11 = vcmask (!%p346_p3), 162816   ;;  %v1039_v63 = vld [vmem:[%s1369_s4] ss:$0 sm:$0xff] (!%p346_p3)  ;;  %vm689_vm12 = vcmask (!%p346_p3), 58368   ;;  %vm794_vm15 = vcmask (!%p346_p3), 195584  }
   0xc   : > { %vm469_vm0 = vcmp.ge.s32.totalorder (!%p346_p3), %v468_v6, 0 }
   0xd   : > { %1074 = vmatpush3.msk.msra.mxu0 (!%p346_p3), %vm546_vm5, %v579_v9 }
   0xe   : > { %s1379_s27 = smov (!%p415_p4, %s1167_s27), 1 }
   0xf   : > { %s1255_s12 = sshll.u32 %s1379_s27, 4 }
  0x10   : > { %s422_s15 = scalar_lea.vmem %s1365_s0, %s1255_s12  ;;  %s435_s18 = scalar_lea.vmem %s1366_s1, %s1255_s12 }
  0x11   : > { %v470_v10 = vld [vmem:[%s422_s15 + $0x5] sm:$0x7]  ;;  %v484_v12 = vld [vmem:[%s435_s18 + $0x8] sm:$0xff]  ;;  %s461_s20 = scalar_lea.vmem %s1373_s8, %s1255_s12 }
  0x12   : > { %v483_v11 = vld [vmem:[%s435_s18] sm:$0xff]  ;;  %v473_v13 = vsel %vm469_vm0, %v470_v10, 0.0  ;;  %v489_v15 = vrot.slane %v484_v12, 5 }
  0x13   : > { %v488_v14 = vrot.slane %v483_v11, 5 }
  0x14   : > { %v1273_v18 = vsel %vm487_vm1, %v489_v15, %v495_v8 }
  0x15   : > { %v490_v16 = vsel %vm487_vm1, %v488_v14, %v489_v15  ;;  %v497_v17 = vsel %vm487_vm1, %v473_v13, %v488_v14  ;;  %v505_v31 = vrot.slane %v1273_v18, 1  ;;  %v520_v32 = vrot.slane %v1273_v18, 2 }
  0x16   : > { %v502_v19 = vrot.slane %v497_v17, 1  ;;  %v503_v20 = vrot.slane %v490_v16, 1  ;;  %v532_v21 = vrot.slane %v497_v17, 3  ;;  %v533_v22 = vrot.slane %v490_v16, 3 }
  0x17   : > { %v517_v23 = vrot.slane %v497_v17, 2  ;;  %v518_v24 = vrot.slane %v490_v16, 2  ;;  %v547_v25 = vrot.slane %v497_v17, 4  ;;  %v548_v26 = vrot.slane %v490_v16, 4 }
  0x18   : > { %v504_v27 = vsel %vm501_vm3, %v502_v19, %v503_v20  ;;  %v534_v28 = vsel %vm531_vm4, %v532_v21, %v533_v22  ;;  %v506_v33 = vsel %vm501_vm3, %v503_v20, %v505_v31  ;;  %v535_v35 = vrot.slane %v1273_v18, 3 }
  0x19   : > { %507 = vrot.lane.b32.xlu0 %v504_v27, %s1180_s21  ;;  %537 = vrot.lane.b32.xlu1 %v534_v28, %s1181_s22  ;;  %v519_v29 = vsel %vm516_vm6, %v517_v23, %v518_v24  ;;  %v549_v30 = vsel %vm546_vm5, %v547_v25, %v548_v26  ;;  %v521_v34 = vsel %vm516_vm6, %v518_v24, %v520_v32  ;;  %v550_v36 = vrot.slane %v1273_v18, 4  ;;  %v1044_v24 = vld [vmem:[%s1370_s5] ss:$0 sm:$0xff] }
  0x1a   : > { %v536_v37 = vsel %vm531_vm4, %v533_v22, %v535_v35 }
  0x1b   : > { %v551_v38 = vsel %vm546_vm5, %v548_v26, %v550_v36 }
  0x1d   : > { %522 = vrot.lane.b32.xlu0 %v519_v29, %s1182_s23  ;;  %552 = vrot.lane.b32.xlu1 %v549_v30, %s1183_s24 }
  0x21   : > { %509 = vrot.lane.b32.xlu0 %v506_v33, %s1180_s21  ;;  %524 = vrot.lane.b32.xlu1 %v521_v34, %s1182_s23 }
  0x25   : > { %539 = vrot.lane.b32.xlu0 %v536_v37, %s1181_s22  ;;  %554 = vrot.lane.b32.xlu1 %v551_v38, %s1183_s24 }
  0x29   : > { %511 = vrot.lane.b32.xlu0 %v505_v31, %s1180_s21  ;;  %526 = vrot.lane.b32.xlu1 %v520_v32, %s1182_s23 }
  0x2d   : > { %541 = vrot.lane.b32.xlu0 %v535_v35, %s1181_s22  ;;  %556 = vrot.lane.b32.xlu1 %v550_v36, %s1183_s24 }
  0x8b   : > { %v508_v39 = vpop.permute.xlu0 %507  ;;  %v538_v40 = vpop.permute.xlu1 %537 }
  0x8c   : > { %v562_v41 = vsel %vm561_vm7, %v497_v17, %v508_v39 }
  0x8f   : > { %v523_v42 = vpop.permute.xlu0 %522  ;;  %v553_v43 = vpop.permute.xlu1 %552 }
  0x90   : > { %v566_v44 = vsel %vm565_vm8, %v562_v41, %v523_v42 }
  0x91   : > { %v570_v45 = vsel %vm569_vm9, %v566_v44, %v538_v40 }
  0x92   : > { %v574_v46 = vsel %vm573_vm10, %v570_v45, %v553_v43  ;;  %v741_v43 = vadd.s32 4294967295, %v1250_v2 }
  0x93   : > { %1076 = vmatmul.mubr.msk.f32.vlgmr.msra.gmra.mrb[0].mxu0 %vm587_vm11, %v574_v46  ;;  %v510_v47 = vpop.permute.xlu0 %509  ;;  %v525_v48 = vpop.permute.xlu1 %524 }
  0x94   : > { %v563_v49 = vsel %vm561_vm7, %v490_v16, %v510_v47  ;;  %1078 = vmatprep.mubr.msk.f32.mxu0 %vm1179_vm2, %v1178_v7  ;;  %vm744_vm13 = vcmp.ge.s32.totalorder %v741_v43, 0  ;;  %v791_v47 = vld [vmem:[%s1371_s6] sm:$0xff] }
  0x95   : > { %v567_v50 = vsel %vm565_vm8, %v563_v49, %v525_v48  ;;  %v792_v48 = vld [vmem:[%s1371_s6 + $0x8] sm:$0xff] }
  0x97   : > { %v540_v51 = vpop.permute.xlu0 %539  ;;  %v555_v52 = vpop.permute.xlu1 %554 }
  0x98   : > { %v571_v53 = vsel %vm569_vm9, %v567_v50, %v540_v51  ;;  %v739_v51 = vadd.s32 16, %v1250_v2 }
  0x99   : > { %v575_v54 = vsel %vm573_vm10, %v571_v53, %v555_v52  ;;  %v1096_v52 = vpack.c.bf16 %v792_v48, %v791_v47 }
  0x9a   : > { %1079 = vmatmul.mubr.msk.f32.gmra.mrb[2].mxu0 %vm587_vm11, %v575_v54 }
  0x9b   : > { %v512_v55 = vpop.permute.xlu0 %511  ;;  %v527_v56 = vpop.permute.xlu1 %526  ;;  %1081 = vmatprep.mubr.msk.f32.mxu0 %vm1179_vm2, %v1178_v7  ;;  %1097 = vmatprep.subr.bf16.mxu1 %v1096_v52 }
  0x9c   : > { %v564_v57 = vsel %vm561_vm7, %v1273_v18, %v512_v55  ;;  %1099 = vmatpush3.bf16.msra.mxu1 %v1096_v52 }
  0x9d   : > { %v568_v58 = vsel %vm565_vm8, %v564_v57, %v527_v56  ;;  %v743_v56 = vadd.s32 4294967295, %v739_v51 }
  0x9f   : > { %v542_v59 = vpop.permute.xlu0 %541  ;;  %v557_v60 = vpop.permute.xlu1 %556  ;;  %vm749_vm14 = vcmp.lt.s32.totalorder %v743_v56, 16 }
  0xa0   : > { %v572_v61 = vsel %vm569_vm9, %v568_v58, %v542_v59  ;;  %v793_v58 = vld [vmem:[%s1371_s6 + $0x10] sm:$0xff] }
  0xa1   : > { %v576_v62 = vsel %vm573_vm10, %v572_v61, %v557_v60  ;;  %1088 = vmatprep.subr.mxu1 %v793_v58 }
  0xa2   : > { %1082 = vmatmul.mubr.msk.f32.gmra.mrb[4].mxu0 %vm587_vm11, %v576_v62  ;;  %1089 = vmatpush3.msra.mxu1 %v793_v58 }
 0x166   : > { %v666_v0 = vpop.f32.mrb[0].mxu0 }
 0x167   : > { %v667_v1 = vadd.f32 %v1039_v63, %v666_v0  ;;  %v1077_v3 = vpop.f32.mrb[1].mxu0 }
 0x169   : > { %v680_v4 = vmul.f32 %v667_v1, %v667_v1 }
 0x16b   : > { %v683_v5 = vsel %vm565_vm8, %v680_v4, 0.0 }
 0x16c   : > { %684 = vadd.xlane.f32.xlu0 %v683_v5 }
 0x16d   : > { %v671_v6 = vpop.f32.mrb[2].mxu0 }
 0x16e   : > { %v672_v7 = vadd.f32 %v1039_v63, %v671_v6  ;;  %v1080_v8 = vpop.f32.mrb[3].mxu0 }
 0x170   : > { %v681_v9 = vmul.f32 %v672_v7, %v672_v7 }
 0x172   : > { %v686_v10 = vsel %vm565_vm8, %v681_v9, 0.0 }
 0x173   : > { %687 = vadd.xlane.f32.xlu1 %v686_v10 }
 0x175   : > { %v676_v11 = vpop.f32.mrb[4].mxu0 }
 0x176   : > { %v677_v12 = vadd.f32 %v1039_v63, %v676_v11  ;;  %v1083_v13 = vpop.f32.mrb[5].mxu0 }
 0x178   : > { %v682_v14 = vmul.f32 %v677_v12, %v677_v12 }
 0x17a   : > { %v690_v15 = vsel %vm689_vm12, %v682_v14, 0.0 }
 0x17b   : > { %691 = vadd.xlane.f32.xlu0 %v690_v15 }
 0x1f9   : > { %v685_v16 = vpop.xlane.xlu0 %684 }
 0x1fa   : > { %v694_v17 = vmul.f32 0.125, %v685_v16 }
 0x1fc   : > { %v697_v18 = vadd.f32 1e-06, %v694_v17 }
 0x1fe   : > { %1131 = vrsqrt.f32 %v697_v18 }
 0x200   : > { %v688_v19 = vpop.xlane.xlu1 %687 }
 0x201   : > { %v695_v20 = vmul.f32 0.125, %v688_v19 }
 0x203   : > { %v698_v21 = vadd.f32 1e-06, %v695_v20 }
 0x205   : > { %1133 = vrsqrt.f32 %v698_v21 }
 0x208   : > { %v1132_v22 = vpop.eup %1131  ;;  %v692_v23 = vpop.xlane.xlu0 %691 }
 0x209   : > { %v703_v25 = vmul.f32 %v1132_v22, %v667_v1  ;;  %v696_v26 = vmul.f32 0.125, %v692_v23 }
 0x20b   : > { %v699_v27 = vadd.f32 1e-06, %v696_v26  ;;  %v713_v28 = vmul.f32 %v1044_v24, %v703_v25  ;;  %v1050_v26 = vld [vmem:[%s1372_s7] ss:$0 sm:$0xff] }
 0x20d   : > { %1135 = vrsqrt.f32 %v699_v27  ;;  %v1045_v29 = vmul.f32 -1.442695, %v713_v28 }
 0x20f   : > { %v1134_v30 = vpop.eup %1133  ;;  %1137 = vpow2.f32 %v1045_v29 }
 0x210   : > { %v704_v31 = vmul.f32 %v1134_v30, %v672_v7 }
 0x212   : > { %v714_v32 = vmul.f32 %v1044_v24, %v704_v31 }
 0x214   : > { %v1046_v33 = vmul.f32 -1.442695, %v714_v32 }
 0x216   : > { %1139 = vpow2.f32 %v1046_v33 }
 0x217   : > { %v1136_v34 = vpop.eup %1135 }
 0x218   : > { %v705_v35 = vmul.f32 %v1136_v34, %v677_v12 }
 0x219   : > { %v1138_v36 = vpop.eup %1137 }
 0x21a   : > { %v725_v37 = vadd.f32 1.0, %v1138_v36  ;;  %v715_v38 = vmul.f32 %v1044_v24, %v705_v35 }
 0x21c   : > { %1141 = vrcp.f32 %v725_v37  ;;  %v1047_v39 = vmul.f32 -1.442695, %v715_v38 }
 0x21e   : > { %1143 = vpow2.f32 %v1047_v39 }
 0x220   : > { %v1140_v40 = vpop.eup %1139 }
 0x221   : > { %v726_v41 = vadd.f32 1.0, %v1140_v40 }
 0x223   : > { %1145 = vrcp.f32 %v726_v41 }
 0x226   : > { %v1142_v42 = vpop.eup %1141 }
 0x227   : > { %v734_v45 = vmul.f32 %v1142_v42, %v713_v28 }
 0x228   : > { %v1144_v44 = vpop.eup %1143 }
 0x229   : > { %v727_v46 = vadd.f32 1.0, %v1144_v44  ;;  %v759_v50 = vsel %vm744_vm13, %v734_v45, 0.0 }
 0x22a   : > { %v765_v54 = vrot.slane %v759_v50, 1  ;;  %v776_v3 = vrot.slane %v759_v50, 2 }
 0x22b   : > { %1147 = vrcp.f32 %v727_v46 }
 0x22d   : > { %v1146_v49 = vpop.eup %1145 }
 0x22e   : > { %v735_v53 = vmul.f32 %v1146_v49, %v714_v32 }
 0x230   : > { %v766_v55 = vrot.slane %v735_v53, 1  ;;  %v777_v61 = vrot.slane %v735_v53, 2 }
 0x232   : > { %v767_v57 = vsel %vm501_vm3, %v765_v54, %v766_v55  ;;  %v778_v4 = vsel %vm516_vm6, %v776_v3, %v777_v61 }
 0x233   : > { %770 = vrot.lane.b32.xlu0 %v767_v57, %s1182_s23 }
 0x235   : > { %v1148_v59 = vpop.eup %1147 }
 0x236   : > { %v736_v2 = vmul.f32 %v1148_v59, %v715_v38 }
 0x238   : > { %v761_v60 = vsel %vm749_vm14, %v736_v2, 0.0 }
 0x239   : > { %v779_v62 = vrot.slane %v761_v60, 2  ;;  %v768_v63 = vrot.slane %v761_v60, 1 }
 0x23b   : > { %v780_v0 = vsel %vm516_vm6, %v777_v61, %v779_v62  ;;  %v769_v1 = vsel %vm501_vm3, %v766_v55, %v768_v63 }
 0x23c   : > { %783 = vrot.lane.b32.xlu0 %v780_v0, %s1183_s24  ;;  %772 = vrot.lane.b32.xlu1 %v769_v1, %s1182_s23 }
 0x240   : > { %781 = vrot.lane.b32.xlu1 %v778_v4, %s1183_s24 }
 0x2a5   : > { %v771_v5 = vpop.permute.xlu0 %770 }
 0x2a6   : > { %v787_v9 = vsel %vm565_vm8, %v759_v50, %v771_v5 }
 0x2ae   : > { %v773_v6 = vpop.permute.xlu1 %772  ;;  %v784_v8 = vpop.permute.xlu0 %783 }
 0x2af   : > { %v788_v7 = vsel %vm565_vm8, %v735_v53, %v773_v6 }
 0x2b0   : > { %v790_v12 = vsel %vm573_vm10, %v788_v7, %v784_v8 }
 0x2b2   : > { %v782_v10 = vpop.permute.xlu1 %781 }
 0x2b3   : > { %v789_v11 = vsel %vm573_vm10, %v787_v9, %v782_v10 }
 0x2b4   : > { %1090 = vmatprep.mubr.msk.f32.mxu1 %vm794_vm15, %v789_v11 }
 0x2b5   : > { %1091 = vmatmul.mubr.msk.f32.vlgmr.msra.gmra.mrb[0].mxu1 %vm794_vm15, %v790_v12 }
 0x388   : > { %v1092_v13 = vpop.f32.mrb[0].mxu1 }
 0x389   : > { %v877_v14 = vmul.f32 %v1092_v13, %v1092_v13  ;;  %v867_v15 = vpop.f32.mrb[1].mxu1 }
 0x38a   : > { %v876_v16 = vmul.f32 %v867_v15, %v867_v15 }
 0x38b   : > { %v881_v17 = vsel %vm565_vm8, %v877_v14, 0.0 }
 0x38c   : > { %882 = vadd.xlane.f32.xlu0 %v881_v17  ;;  %v878_v18 = vsel %vm565_vm8, %v876_v16, 0.0 }
 0x38d   : > { %879 = vadd.xlane.f32.xlu1 %v878_v18 }
 0x419   : > { %v883_v19 = vpop.xlane.xlu0 %882 }
 0x41a   : > { %v885_v20 = vmul.f32 0.125, %v883_v19  ;;  %v880_v21 = vpop.xlane.xlu1 %879 }
 0x41b   : > { %v884_v22 = vmul.f32 0.125, %v880_v21 }
 0x41c   : > { %v887_v23 = vadd.f32 1e-06, %v885_v20 }
 0x41d   : > { %v886_v24 = vadd.f32 1e-06, %v884_v22 }
 0x41e   : > { %1149 = vrsqrt.f32 %v887_v23 }
 0x41f   : > { %1151 = vrsqrt.f32 %v886_v24 }
 0x428   : > { %v1150_v25 = vpop.eup %1149 }
 0x429   : > { %v1152_v27 = vpop.eup %1151  ;;  %v891_v28 = vmul.f32 %v1150_v25, %v1092_v13 }
 0x42a   : > { %v890_v29 = vmul.f32 %v1152_v27, %v867_v15 }
 0x42b   : > { %v900_v30 = vmul.f32 %v1050_v26, %v891_v28 }
 0x42c   : > { %v899_v31 = vmul.f32 %v1050_v26, %v890_v29 }
 0x42d   : > { %902 = vst.msk [vmem:[%s461_s20 + $0x8] sm:$0xff] %vm565_vm8, %v900_v30 }
 0x42e   : > { %901 = vst.msk [vmem:[%s461_s20] sm:$0xff] %vm565_vm8, %v899_v31 }
 0x42f PF: > { %s18_s28 = sadd.s32 1, %s1175_s28   ;;  %s1374_s27 = smov %s1171_s2 }
 0x430   : > { %p15_p5 = scmp.ge.s32.totalorder %s18_s28, 4   ;;  %s1375_s2 = smov %s1377_s29 }
 0x432   :  { %17 = sbr.rel (!%p15_p5) target bundleno = 2 (0x2), region = 88 }

</bundles_post_ra>
